<compile_context>
chip_gen: v7x
topology: tpu7x:2x2x1
jax: 0.10.0
libtpu: 0.0.40
codegen_flags: <defaults>
</compile_context>

<pallas_src>
import functools

import jax
import jax.numpy as jnp
from jax import lax
from jax.experimental import pallas as pl
from jax.experimental.pallas import tpu as pltpu

EPS = 1e-12


def _conv_kernel(x_ref, w_ref, b_ref, m_ref, y_ref, xpad_ref, patch_ref,
                 *, H, W, kh, kw, Nb):
    """Fused 'same' conv for Nb images via one depth-(kh*kw*C) matmul.

    x_ref:     (Nb, C, H*W)        unpadded flattened images
    w_ref:     (O, kh*kw*C)        sigma-scaled taps (VMEM-resident)
    b_ref:     (O, 1)              bias (resident)
    m_ref:     (kw, 1, H*W)        precomputed horizontal-edge masks (resident)
    y_ref:     (Nb, O, H*W)        lane-dense output
    xpad_ref:  (Nb, C, H*W+2*pad)  haloed activation scratch
    patch_ref: (kh*kw*C, Nb*H*W)   packed im2col scratch
    """
    HW = H * W
    C = x_ref.shape[1]
    pad = (kh // 2) * W + (kw // 2)

    # Refresh the haloed scratch: the zero fill provides the vertical zero
    # padding; the data region is overwritten with this step's images.  Done
    # unconditionally (tiny VMEM stores) so it stays correct under megacore
    # sharding of the parallel grid axis (per-core scratch).
    xpad_ref[...] = jnp.zeros_like(xpad_ref)
    xpad_ref[:, :, pad:pad + HW] = x_ref[...]

    # Pack kh*kw shifted (and horizontally masked) windows into one im2col
    # slab so the conv is a single (O, kh*kw*C) @ (kh*kw*C, Nb*HW) matmul
    # instead of kh*kw separate depth-C matmuls.
    for di in range(kh):
        for dj in range(kw):
            k = di * kw + dj
            start = pad + (di - kh // 2) * W + (dj - kw // 2)
            for n in range(Nb):
                xs = xpad_ref[n, :, start:start + HW]            # (C, HW)
                if dj != kw // 2:                                 # horizontal edge
                    xs = xs * m_ref[dj]                           # (1, HW) bcast
                patch_ref[k * C:(k + 1) * C, n * HW:(n + 1) * HW] = xs

    acc = jnp.dot(w_ref[...], patch_ref[...],
                  preferred_element_type=jnp.float32)             # (O, Nb*HW)
    acc = acc + b_ref[...]
    for n in range(Nb):
        y_ref[n] = acc[:, n * HW:(n + 1) * HW].astype(y_ref.dtype)


def _pick_batch_block(N, bytes_per_image, target_bytes=512 * 1024):
    """Largest divisor of N that (a) keeps per-step traffic near the target
    and (b) leaves >= 2 grid steps when N >= 2 (v7x: keep both TCs busy)."""
    target_nb = max(1, target_bytes // max(1, bytes_per_image))
    best = 1
    for nb in range(1, N + 1):
        if N % nb != 0 or nb > target_nb:
            continue
        if N >= 2 and (N // nb) < 2:
            continue
        best = nb
    return best


def spectral_norm_conv2d(x, w_bar, bias, u, padding=1):
    """Forward of SpectralNorm(nn.Conv2d(C, O, kh, padding=kh//2)).

    Returns (y_nchw, u_new, v_new).  With power_iterations=1 the stored `v`
    is overwritten before being read, so it is not an input (matches PyTorch).
    """
    N, C, H, W = x.shape
    O, Ci, kh, kw = w_bar.shape
    assert Ci == C and padding == kh // 2 and padding == kw // 2
    assert kh % 2 == 1 and kw % 2 == 1
    K = C * kh * kw
    HW = H * W
    pad = (kh // 2) * W + (kw // 2)          # generalizes beyond 3x3
    f32 = jnp.float32

    # ---- power iteration: O x K matvec, hoisted to plain jnp ---------------
    wf = w_bar.reshape(O, K).astype(f32)                 # PyTorch w.view(O,-1)
    u0 = u.astype(f32)
    v = wf.T @ u0
    v = v / (jnp.linalg.norm(v) + EPS)
    t = wf @ v                                            # W v (reused twice)
    u_new = t / (jnp.linalg.norm(t) + EPS)
    sigma = jnp.dot(u_new, t)                             # u . (W v)

    # Sigma-scaled taps, laid out (O, kh*kw*C) to match the packed patches:
    # column index = (di*kw + dj)*C + c.
    w_fused = jnp.transpose(w_bar.astype(f32), (0, 2, 3, 1)).reshape(O, K) / sigma
    b2 = bias.reshape(O, 1).astype(f32)

    # Horizontal-edge masks (one per kernel column offset), precomputed once.
    col = jnp.arange(HW, dtype=jnp.int32) % W
    m = jnp.stack([((col + (dj - kw // 2) >= 0) & (col + (dj - kw // 2) < W))
                   .astype(f32) for dj in range(kw)]).reshape(kw, 1, HW)

    x_flat = x.reshape(N, C, HW).astype(f32)              # no wrapper padding

    bytes_per_image = (C * HW + O * HW) * 4
    Nb = _pick_batch_block(N, bytes_per_image)
    grid_n = N // Nb
    step_bytes = Nb * bytes_per_image
    vmem_limit = int(min(48 * 2 ** 20, max(16 * 2 ** 20, 8 * step_bytes)))

    conv = functools.partial(_conv_kernel, H=H, W=W, kh=kh, kw=kw, Nb=Nb)
    y = pl.pallas_call(
        conv,
        grid=(grid_n,),
        in_specs=[
            pl.BlockSpec((Nb, C, HW), lambda n: (n, 0, 0)),      # per-step images
            pl.BlockSpec((O, K), lambda n: (0, 0)),              # resident taps
            pl.BlockSpec((O, 1), lambda n: (0, 0)),              # resident bias
            pl.BlockSpec((kw, 1, HW), lambda n: (0, 0, 0)),      # resident masks
        ],
        out_specs=pl.BlockSpec((Nb, O, HW), lambda n: (n, 0, 0)),
        out_shape=jax.ShapeDtypeStruct((N, O, HW), x.dtype),
        scratch_shapes=[
            pltpu.VMEM((Nb, C, HW + 2 * pad), f32),   # haloed activations
            pltpu.VMEM((K, Nb * HW), f32),            # packed im2col slab
        ],
        compiler_params=pltpu.CompilerParams(
            dimension_semantics=("parallel",),        # shard batch across TCs
            vmem_limit_bytes=vmem_limit),
    )(x_flat, w_fused, b2, m)

    # (N, O, H*W) -> (N, O, H, W): pure reshape, no transpose.
    return y.reshape(N, O, H, W), u_new, v


def _reference(x, w_bar, bias, u):
    """Pure-JAX reference mirroring the PyTorch forward."""
    O = w_bar.shape[0]
    wf = w_bar.reshape(O, -1)
    v = wf.T @ u
    v = v / (jnp.linalg.norm(v) + EPS)
    un = wf @ v
    un = un / (jnp.linalg.norm(un) + EPS)
    sigma = jnp.dot(un, wf @ v)
    wn = w_bar / sigma
    y = lax.conv_general_dilated(x, wn, (1, 1), ((1, 1), (1, 1)),
                                 dimension_numbers=('NCHW', 'OIHW', 'NCHW'))
    return y + bias.reshape(1, O, 1, 1), un, v


if __name__ == "__main__":
    key = jax.random.PRNGKey(0)
    k_x, k_w, k_b, k_u, k_v = jax.random.split(key, 5)

    # SpectralNorm(nn.Conv2d(4, 8, kernel_size=3, padding=1))
    N, C, H, W = 2, 4, 16, 16
    O, kh, kw = 8, 3, 3
    K = C * kh * kw

    x = jax.random.normal(k_x, (N, C, H, W), dtype=jnp.float32)
    w_bar = jax.random.normal(k_w, (O, C, kh, kw), dtype=jnp.float32) * 0.1
    bias = jax.random.normal(k_b, (O,), dtype=jnp.float32) * 0.1
    # u, v ~ N(0,1) then l2-normalized, as in _make_params
    u0 = jax.random.normal(k_u, (O,), dtype=jnp.float32)
    u0 = u0 / (jnp.linalg.norm(u0) + EPS)
    v0 = jax.random.normal(k_v, (K,), dtype=jnp.float32)
    v0 = v0 / (jnp.linalg.norm(v0) + EPS)   # unused: overwritten before read

    fwd = jax.jit(spectral_norm_conv2d, static_argnames=("padding",))
    y, u_new, v_new = fwd(x, w_bar, bias, u0)
    jax.block_until_ready((y, u_new, v_new))

    y_ref, u_ref, v_ref = _reference(x, w_bar, bias, u0)
    assert y.shape == (N, O, H, W)
    assert jnp.allclose(y, y_ref, atol=1e-3, rtol=1e-3), "y mismatch vs reference"
    assert jnp.allclose(u_new, u_ref, atol=1e-4, rtol=1e-3), "u mismatch vs reference"
    assert jnp.allclose(v_new, v_ref, atol=1e-4, rtol=1e-3), "v mismatch vs reference"

    print("KERNEL_OK")
</pallas_src>

<mosaic_0001>
module attributes {stable_mosaic.version = 11 : i64} {
  func.func @_conv_kernel(%arg0: i32, %arg1: memref<1x4x256xf32, #tpu.memory_space<vmem>>, %arg2: memref<8x36xf32, #tpu.memory_space<vmem>>, %arg3: memref<8x1xf32, #tpu.memory_space<vmem>>, %arg4: memref<3x1x256xf32, #tpu.memory_space<vmem>>, %arg5: memref<1x8x256xf32, #tpu.memory_space<vmem>>, %arg6: memref<1x4x290xf32, #tpu.memory_space<vmem>>, %arg7: memref<36x256xf32, #tpu.memory_space<vmem>>) attributes {dimension_semantics = [#tpu.dimension_semantics<parallel>], iteration_bounds = array<i64: 2>, scalar_prefetch = 0 : i64, scratch_operands = 2 : i64, tpu.core_type = #tpu.core_type<tc>, window_params = [{transform_indices = @transform_0, window_bounds = array<i64: 1, 4, 256>}, {pipeline_mode = #tpu.pipeline_mode<synchronous>, transform_indices = @transform_1, window_bounds = array<i64: 8, 36>}, {pipeline_mode = #tpu.pipeline_mode<synchronous>, transform_indices = @transform_2, window_bounds = array<i64: 8, 1>}, {pipeline_mode = #tpu.pipeline_mode<synchronous>, transform_indices = @transform_3, window_bounds = array<i64: 3, 1, 256>}, {transform_indices = @transform_4, window_bounds = array<i64: 1, 8, 256>}]} {
    %cst = arith.constant 0.000000e+00 : f32
    %0 = vector.broadcast %cst : f32 to vector<1x4x290xf32>
    %c0 = arith.constant 0 : index
    %c0_0 = arith.constant 0 : index
    %c0_1 = arith.constant 0 : index
    %1 = vector.load %arg6[%c0, %c0_0, %c0_1] : memref<1x4x290xf32, #tpu.memory_space<vmem>>, vector<1x4x290xf32>
    tpu.vector_store %arg6[%c0, %c0_0, %c0_1], %0 {strides = array<i32>} : memref<1x4x290xf32, #tpu.memory_space<vmem>>, vector<1x4x290xf32>,
    %c0_2 = arith.constant 0 : index
    %c0_3 = arith.constant 0 : index
    %c0_4 = arith.constant 0 : index
    %2 = vector.load %arg1[%c0_2, %c0_3, %c0_4] : memref<1x4x256xf32, #tpu.memory_space<vmem>>, vector<1x4x256xf32>
    %c0_5 = arith.constant 0 : index
    %c0_6 = arith.constant 0 : index
    %c17 = arith.constant 17 : index
    %3 = vector.load %arg6[%c0_5, %c0_6, %c17] : memref<1x4x290xf32, #tpu.memory_space<vmem>>, vector<1x4x256xf32>
    tpu.vector_store %arg6[%c0_5, %c0_6, %c17], %2 {strides = array<i32>} : memref<1x4x290xf32, #tpu.memory_space<vmem>>, vector<1x4x256xf32>,
    %c0_7 = arith.constant 0 : index
    %c0_8 = arith.constant 0 : index
    %c0_9 = arith.constant 0 : index
    %4 = vector.load %arg6[%c0_7, %c0_8, %c0_9] : memref<1x4x290xf32, #tpu.memory_space<vmem>>, vector<1x4x256xf32>
    %5 = vector.shape_cast %4 : vector<1x4x256xf32> to vector<4x256xf32>
    %c0_10 = arith.constant 0 : index
    %c0_11 = arith.constant 0 : index
    %c0_12 = arith.constant 0 : index
    %6 = vector.load %arg4[%c0_10, %c0_11, %c0_12] : memref<3x1x256xf32, #tpu.memory_space<vmem>>, vector<1x1x256xf32>
    %7 = vector.shape_cast %6 : vector<1x1x256xf32> to vector<1x256xf32>
    %8 = vector.broadcast %7 : vector<1x256xf32> to vector<4x256xf32>
    %9 = arith.mulf %5, %8 : vector<4x256xf32>
    %c0_13 = arith.constant 0 : index
    %c0_14 = arith.constant 0 : index
    %10 = vector.load %arg7[%c0_13, %c0_14] : memref<36x256xf32, #tpu.memory_space<vmem>>, vector<4x256xf32>
    tpu.vector_store %arg7[%c0_13, %c0_14], %9 {strides = array<i32>} : memref<36x256xf32, #tpu.memory_space<vmem>>, vector<4x256xf32>,
    %c0_15 = arith.constant 0 : index
    %c0_16 = arith.constant 0 : index
    %c1 = arith.constant 1 : index
    %11 = vector.load %arg6[%c0_15, %c0_16, %c1] : memref<1x4x290xf32, #tpu.memory_space<vmem>>, vector<1x4x256xf32>
    %12 = vector.shape_cast %11 : vector<1x4x256xf32> to vector<4x256xf32>
    %c4 = arith.constant 4 : index
    %c0_17 = arith.constant 0 : index
    %13 = vector.load %arg7[%c4, %c0_17] : memref<36x256xf32, #tpu.memory_space<vmem>>, vector<4x256xf32>
    tpu.vector_store %arg7[%c4, %c0_17], %12 {strides = array<i32>} : memref<36x256xf32, #tpu.memory_space<vmem>>, vector<4x256xf32>,
    %c0_18 = arith.constant 0 : index
    %c0_19 = arith.constant 0 : index
    %c2 = arith.constant 2 : index
    %14 = vector.load %arg6[%c0_18, %c0_19, %c2] : memref<1x4x290xf32, #tpu.memory_space<vmem>>, vector<1x4x256xf32>
    %15 = vector.shape_cast %14 : vector<1x4x256xf32> to vector<4x256xf32>
    %c2_20 = arith.constant 2 : index
    %c0_21 = arith.constant 0 : index
    %c0_22 = arith.constant 0 : index
    %16 = vector.load %arg4[%c2_20, %c0_21, %c0_22] : memref<3x1x256xf32, #tpu.memory_space<vmem>>, vector<1x1x256xf32>
    %17 = vector.shape_cast %16 : vector<1x1x256xf32> to vector<1x256xf32>
    %18 = vector.broadcast %17 : vector<1x256xf32> to vector<4x256xf32>
    %19 = arith.mulf %15, %18 : vector<4x256xf32>
    %c8 = arith.constant 8 : index
    %c0_23 = arith.constant 0 : index
    %20 = vector.load %arg7[%c8, %c0_23] : memref<36x256xf32, #tpu.memory_space<vmem>>, vector<4x256xf32>
    tpu.vector_store %arg7[%c8, %c0_23], %19 {strides = array<i32>} : memref<36x256xf32, #tpu.memory_space<vmem>>, vector<4x256xf32>,
    %c0_24 = arith.constant 0 : index
    %c0_25 = arith.constant 0 : index
    %c16 = arith.constant 16 : index
    %21 = vector.load %arg6[%c0_24, %c0_25, %c16] : memref<1x4x290xf32, #tpu.memory_space<vmem>>, vector<1x4x256xf32>
    %22 = vector.shape_cast %21 : vector<1x4x256xf32> to vector<4x256xf32>
    %c0_26 = arith.constant 0 : index
    %c0_27 = arith.constant 0 : index
    %c0_28 = arith.constant 0 : index
    %23 = vector.load %arg4[%c0_26, %c0_27, %c0_28] : memref<3x1x256xf32, #tpu.memory_space<vmem>>, vector<1x1x256xf32>
    %24 = vector.shape_cast %23 : vector<1x1x256xf32> to vector<1x256xf32>
    %25 = vector.broadcast %24 : vector<1x256xf32> to vector<4x256xf32>
    %26 = arith.mulf %22, %25 : vector<4x256xf32>
    %c12 = arith.constant 12 : index
    %c0_29 = arith.constant 0 : index
    %27 = vector.load %arg7[%c12, %c0_29] : memref<36x256xf32, #tpu.memory_space<vmem>>, vector<4x256xf32>
    tpu.vector_store %arg7[%c12, %c0_29], %26 {strides = array<i32>} : memref<36x256xf32, #tpu.memory_space<vmem>>, vector<4x256xf32>,
    %c0_30 = arith.constant 0 : index
    %c0_31 = arith.constant 0 : index
    %c17_32 = arith.constant 17 : index
    %28 = vector.load %arg6[%c0_30, %c0_31, %c17_32] : memref<1x4x290xf32, #tpu.memory_space<vmem>>, vector<1x4x256xf32>
    %29 = vector.shape_cast %28 : vector<1x4x256xf32> to vector<4x256xf32>
    %c16_33 = arith.constant 16 : index
    %c0_34 = arith.constant 0 : index
    %30 = vector.load %arg7[%c16_33, %c0_34] : memref<36x256xf32, #tpu.memory_space<vmem>>, vector<4x256xf32>
    tpu.vector_store %arg7[%c16_33, %c0_34], %29 {strides = array<i32>} : memref<36x256xf32, #tpu.memory_space<vmem>>, vector<4x256xf32>,
    %c0_35 = arith.constant 0 : index
    %c0_36 = arith.constant 0 : index
    %c18 = arith.constant 18 : index
    %31 = vector.load %arg6[%c0_35, %c0_36, %c18] : memref<1x4x290xf32, #tpu.memory_space<vmem>>, vector<1x4x256xf32>
    %32 = vector.shape_cast %31 : vector<1x4x256xf32> to vector<4x256xf32>
    %c2_37 = arith.constant 2 : index
    %c0_38 = arith.constant 0 : index
    %c0_39 = arith.constant 0 : index
    %33 = vector.load %arg4[%c2_37, %c0_38, %c0_39] : memref<3x1x256xf32, #tpu.memory_space<vmem>>, vector<1x1x256xf32>
    %34 = vector.shape_cast %33 : vector<1x1x256xf32> to vector<1x256xf32>
    %35 = vector.broadcast %34 : vector<1x256xf32> to vector<4x256xf32>
    %36 = arith.mulf %32, %35 : vector<4x256xf32>
    %c20 = arith.constant 20 : index
    %c0_40 = arith.constant 0 : index
    %37 = vector.load %arg7[%c20, %c0_40] : memref<36x256xf32, #tpu.memory_space<vmem>>, vector<4x256xf32>
    tpu.vector_store %arg7[%c20, %c0_40], %36 {strides = array<i32>} : memref<36x256xf32, #tpu.memory_space<vmem>>, vector<4x256xf32>,
    %c0_41 = arith.constant 0 : index
    %c0_42 = arith.constant 0 : index
    %c32 = arith.constant 32 : index
    %38 = vector.load %arg6[%c0_41, %c0_42, %c32] : memref<1x4x290xf32, #tpu.memory_space<vmem>>, vector<1x4x256xf32>
    %39 = vector.shape_cast %38 : vector<1x4x256xf32> to vector<4x256xf32>
    %c0_43 = arith.constant 0 : index
    %c0_44 = arith.constant 0 : index
    %c0_45 = arith.constant 0 : index
    %40 = vector.load %arg4[%c0_43, %c0_44, %c0_45] : memref<3x1x256xf32, #tpu.memory_space<vmem>>, vector<1x1x256xf32>
    %41 = vector.shape_cast %40 : vector<1x1x256xf32> to vector<1x256xf32>
    %42 = vector.broadcast %41 : vector<1x256xf32> to vector<4x256xf32>
    %43 = arith.mulf %39, %42 : vector<4x256xf32>
    %c24 = arith.constant 24 : index
    %c0_46 = arith.constant 0 : index
    %44 = vector.load %arg7[%c24, %c0_46] : memref<36x256xf32, #tpu.memory_space<vmem>>, vector<4x256xf32>
    tpu.vector_store %arg7[%c24, %c0_46], %43 {strides = array<i32>} : memref<36x256xf32, #tpu.memory_space<vmem>>, vector<4x256xf32>,
    %c0_47 = arith.constant 0 : index
    %c0_48 = arith.constant 0 : index
    %c33 = arith.constant 33 : index
    %45 = vector.load %arg6[%c0_47, %c0_48, %c33] : memref<1x4x290xf32, #tpu.memory_space<vmem>>, vector<1x4x256xf32>
    %46 = vector.shape_cast %45 : vector<1x4x256xf32> to vector<4x256xf32>
    %c28 = arith.constant 28 : index
    %c0_49 = arith.constant 0 : index
    %47 = vector.load %arg7[%c28, %c0_49] : memref<36x256xf32, #tpu.memory_space<vmem>>, vector<4x256xf32>
    tpu.vector_store %arg7[%c28, %c0_49], %46 {strides = array<i32>} : memref<36x256xf32, #tpu.memory_space<vmem>>, vector<4x256xf32>,
    %c0_50 = arith.constant 0 : index
    %c0_51 = arith.constant 0 : index
    %c34 = arith.constant 34 : index
    %48 = vector.load %arg6[%c0_50, %c0_51, %c34] : memref<1x4x290xf32, #tpu.memory_space<vmem>>, vector<1x4x256xf32>
    %49 = vector.shape_cast %48 : vector<1x4x256xf32> to vector<4x256xf32>
    %c2_52 = arith.constant 2 : index
    %c0_53 = arith.constant 0 : index
    %c0_54 = arith.constant 0 : index
    %50 = vector.load %arg4[%c2_52, %c0_53, %c0_54] : memref<3x1x256xf32, #tpu.memory_space<vmem>>, vector<1x1x256xf32>
    %51 = vector.shape_cast %50 : vector<1x1x256xf32> to vector<1x256xf32>
    %52 = vector.broadcast %51 : vector<1x256xf32> to vector<4x256xf32>
    %53 = arith.mulf %49, %52 : vector<4x256xf32>
    %c32_55 = arith.constant 32 : index
    %c0_56 = arith.constant 0 : index
    %54 = vector.load %arg7[%c32_55, %c0_56] : memref<36x256xf32, #tpu.memory_space<vmem>>, vector<4x256xf32>
    tpu.vector_store %arg7[%c32_55, %c0_56], %53 {strides = array<i32>} : memref<36x256xf32, #tpu.memory_space<vmem>>, vector<4x256xf32>,
    %c0_57 = arith.constant 0 : index
    %c0_58 = arith.constant 0 : index
    %55 = vector.load %arg2[%c0_57, %c0_58] : memref<8x36xf32, #tpu.memory_space<vmem>>, vector<8x36xf32>
    %c0_59 = arith.constant 0 : index
    %c0_60 = arith.constant 0 : index
    %56 = vector.load %arg7[%c0_59, %c0_60] : memref<36x256xf32, #tpu.memory_space<vmem>>, vector<36x256xf32>
    %cst_61 = arith.constant dense<0.000000e+00> : vector<8x256xf32>
    %57 = tpu.matmul %55, %56, %cst_61 {dimension_numbers = #tpu.dot_dimension_numbers<[1], [0], [0], [1], [0, 0, 1, 1], [], []>} : vector<8x36xf32>, vector<36x256xf32>, vector<8x256xf32> -> vector<8x256xf32>
    %c0_62 = arith.constant 0 : index
    %c0_63 = arith.constant 0 : index
    %58 = vector.load %arg3[%c0_62, %c0_63] : memref<8x1xf32, #tpu.memory_space<vmem>>, vector<8x1xf32>
    %59 = vector.broadcast %58 : vector<8x1xf32> to vector<8x256xf32>
    %60 = arith.addf %57, %59 : vector<8x256xf32>
    %c0_64 = arith.constant 0 : index
    %c0_65 = arith.constant 0 : index
    %c0_66 = arith.constant 0 : index
    %61 = vector.load %arg5[%c0_64, %c0_65, %c0_66] : memref<1x8x256xf32, #tpu.memory_space<vmem>>, vector<1x8x256xf32>
    %62 = vector.shape_cast %61 : vector<1x8x256xf32> to vector<8x256xf32>
    %63 = vector.shape_cast %60 : vector<8x256xf32> to vector<1x8x256xf32>
    tpu.vector_store %arg5[%c0_64, %c0_65, %c0_66], %63 {strides = array<i32>} : memref<1x8x256xf32, #tpu.memory_space<vmem>>, vector<1x8x256xf32>,
    return
  }
  func.func @transform_0(%arg0: i32) -> (i32, i32, i32) {
    %c0_i32 = arith.constant 0 : i32
    %c0_i32_0 = arith.constant 0 : i32
    %c0_i32_1 = arith.constant 0 : i32
    return %arg0, %c0_i32, %c0_i32_0 : i32, i32, i32
  }
  func.func @transform_1(%arg0: i32) -> (i32, i32) {
    %c0_i32 = arith.constant 0 : i32
    %c0_i32_0 = arith.constant 0 : i32
    %c0_i32_1 = arith.constant 0 : i32
    return %c0_i32, %c0_i32_0 : i32, i32
  }
  func.func @transform_2(%arg0: i32) -> (i32, i32) {
    %c0_i32 = arith.constant 0 : i32
    %c0_i32_0 = arith.constant 0 : i32
    %c0_i32_1 = arith.constant 0 : i32
    return %c0_i32, %c0_i32_0 : i32, i32
  }
  func.func @transform_3(%arg0: i32) -> (i32, i32, i32) {
    %c0_i32 = arith.constant 0 : i32
    %c0_i32_0 = arith.constant 0 : i32
    %c0_i32_1 = arith.constant 0 : i32
    %c0_i32_2 = arith.constant 0 : i32
    return %c0_i32, %c0_i32_0, %c0_i32_1 : i32, i32, i32
  }
  func.func @transform_4(%arg0: i32) -> (i32, i32, i32) {
    %c0_i32 = arith.constant 0 : i32
    %c0_i32_0 = arith.constant 0 : i32
    %c0_i32_1 = arith.constant 0 : i32
    return %arg0, %c0_i32, %c0_i32_0 : i32, i32, i32
  }
}

</mosaic_0001>

<bundles_post_ra>
// kernel: spectral_norm_conv2d.1
= control target key start
LH: loop header
LB: loop body
LE: loop exit
PB: predicated region body
PF: predicated region fallthrough
CT: control target
= control target key end

     0   :  { %s745_s15 = smov 0   ;;  %s826_s0 = inlined_call_operand.vmem [shape: f32[2,4,256], index: 0, kind: input, shape index: {}]   ;;  %s827_s1 = inlined_call_operand.vmem [shape: f32[8,36], index: 1, kind: input, shape index: {}]   ;;  %s828_s2 = inlined_call_operand.vmem [shape: f32[8,1], index: 2, kind: input, shape index: {}]   ;;  %s829_s3 = inlined_call_operand.vmem [shape: f32[3,1,256], index: 3, kind: input, shape index: {}]   ;;  %s830_s4 = inlined_call_operand.vmem [shape: f32[2,8,256], index: 4, kind: output, shape index: {}]  }
   0x1 LB: > { %s640_s16 = sadd.s32 4294967295, %s702_s15   ;;  %p644_p0 = scmp.ge.s32.totalorder %s702_s15, 1  ;;  %s702_s15 = sphi %s745_s15, %s14_s15  }
   0x2   : > { %p162_p1 = scmp.lt.s32.totalorder %s702_s15, 3 }
   0x4   : > { %p163_p2 = pnand %p644_p0, %p162_p1 }
   0x5   : > { %p188_p3 = scmp.lt.s32.totalorder (!%p163_p2), %s640_s16, 1  ;;  %v219_v0 = vlaneseq (!%p163_p2)  ;;  %vm199_vm0 = vcmask (!%p163_p2), 273408   ;;  %v295_v2 = vld [vmem:[%s829_s3] sm:$0x3] (!%p163_p2)  ;;  %v649_v3 = vld [vmem:[%s829_s3 + $0x4] sm:$0x3] (!%p163_p2) }
   0x6   : > { %166 = sbr.rel (%p163_p2) target bundleno = 529 (0x211), region = 36  ;;  %v391_v4 = vld [vmem:[%s829_s3] sm:$0x3] (!%p163_p2)  ;;  %v704_v5 = vmov (!%p163_p2), 0.0   ;;  %v650_v8 = vld [vmem:[%s829_s3 + $0x4] sm:$0x3] (!%p163_p2) }
   0x7   : > { %v220_v1 = vshrl.u32 (!%p163_p2), %v219_v0, 7  ;;  %198 = vst [vmem:[#allocation2] sm:$0xff] (!%p163_p2), %v704_v5  ;;  %200 = vst.msk [vmem:[#allocation2 + $0x8] sm:$0xf] (!%p163_p2), %vm199_vm0, %v704_v5  ;;  %576 = vmatprep.mubr.f32.mxu0 (!%p163_p2), %v704_v5  ;;  %v217_v14 = vld [vmem:[%s829_s3] sm:$0x3] (!%p163_p2) }
   0x8   : > { %s705_s5 = smov (!%p163_p2), 17   ;;  %v651_v19 = vld [vmem:[%s829_s3 + $0x4] sm:$0x3] (!%p163_p2)  ;;  %s706_s8 = smov (!%p163_p2), 16   ;;  %vm210_vm1 = vcmask (!%p163_p2), 1043592   ;;  %vm211_vm2 = vcmask (!%p163_p2), 1047556  }
   0x9   : > { %v221_v6 = vsub.s32 (!%p163_p2), 0, %v220_v1  ;;  %v225_v7 = vsub.s32 (!%p163_p2), 1, %v220_v1  ;;  %s707_s9 = smov (!%p163_p2), 2   ;;  %s708_s10 = smov (!%p163_p2), 32   ;;  %vm206_vm3 = vcmask (!%p163_p2), 138240   ;;  %vm214_vm4 = vcmask (!%p163_p2), 134144   ;;  %vm212_vm5 = vmor (!%p163_p2), %vm211_vm2, %vm210_vm1 }
   0xa   : > { %s709_s11 = smov (!%p163_p2), 18   ;;  %s710_s12 = smov (!%p163_p2), 34   ;;  %vm271_vm6 = vcmask (!%p163_p2), 15360   ;;  %vm309_vm7 = vcmask (!%p163_p2), 130048   ;;  %vm366_vm8 = vcmask (!%p163_p2), 146432   ;;  %vm405_vm9 = vcmask (!%p163_p2), 261120  }
   0xb   : > { %v300_v10 = vrot.slane (!%p163_p2), %v295_v2, %v221_v6  ;;  %v304_v11 = vrot.slane (!%p163_p2), %v295_v2, %v225_v7  ;;  %v262_v12 = vrot.slane (!%p163_p2), %v649_v3, %v221_v6  ;;  %v266_v13 = vrot.slane (!%p163_p2), %v649_v3, %v225_v7  ;;  %s711_s13 = smov (!%p163_p2), 95   ;;  %s712_s14 = smov (!%p163_p2), 111  }
   0xc   : > { %v396_v15 = vrot.slane (!%p163_p2), %v391_v4, %v221_v6  ;;  %v400_v16 = vrot.slane (!%p163_p2), %v391_v4, %v225_v7  ;;  %v357_v17 = vrot.slane (!%p163_p2), %v650_v8, %v221_v6  ;;  %v361_v18 = vrot.slane (!%p163_p2), %v650_v8, %v225_v7  ;;  %s713_s17 = smov (!%p163_p2), 127   ;;  %s714_s18 = smov (!%p163_p2), 96  }
   0xd   : > { %s832_s16 = smov (!%p188_p3, %s640_s16), 1  ;;  %v305_v20 = vcombine.low %v300_v10, %v304_v11  ;;  %v267_v21 = vcombine.low %v262_v12, %v266_v13  ;;  %v222_v22 = vrot.slane %v217_v14, %v221_v6  ;;  %v453_v24 = vrot.slane %v651_v19, %v221_v6  ;;  %s715_s19 = smov 126  }
   0xe   : > { %s657_s23 = sshll.u32 %s832_s16, 3  ;;  %v401_v23 = vcombine.low %v396_v15, %v400_v16  ;;  %v457_v25 = vrot.slane %v651_v19, %v225_v7  ;;  %v226_v26 = vrot.slane %v217_v14, %v225_v7  ;;  %v362_v27 = vcombine.low %v357_v17, %v361_v18  ;;  %s716_s20 = smov 112   ;;  %v495_v15 = vld [vmem:[%s828_s2] sm:$0xff] }
   0xf   : > { %s192_s28 = scalar_lea.vmem %s826_s0, %s657_s23  ;;  %306 = vrot.lane.b32.xlu1 %v305_v20, %s706_s8  ;;  %s717_s21 = smov 110   ;;  %vm462_vm10 = vcmask 277504   ;;  %v719_v14 = vmov 0   ;;  %vm247_vm11 = vcmask 1039360   ;;  %vm439_vm12 = vcmask 777216  }
  0x10   : > { %v201_v9 = vld [vmem:[%s192_s28] sm:$0xff]  ;;  %v227_v28 = vcombine.low %v222_v22, %v226_v26  ;;  %v458_v29 = vcombine.low %v453_v24, %v457_v25  ;;  %s718_s22 = smov 94   ;;  %691 = vset.pattern.permute.xlu0 %v719_v14  ;;  %vm343_vm13 = vcmask 908288   ;;  %vm382_vm14 = vcmask 900096   ;;  %s658_s27 = sshll.u32 %s832_s16, 4 }
  0x11   : > { %203 = vrot.lane.b32.xlu0 %v201_v9, %s705_s5  ;;  %vm286_vm15 = vcmask 1031168   ;;  %vm325_vm0 = vcmask 916480   ;;  %vm420_vm1 = vcmask 785408   ;;  %vm477_vm2 = vcmask 769024   ;;  %s197_s30 = scalar_lea.vmem %s830_s4, %s658_s27 }
  0x13   : > { %402 = vrot.lane.b32.xlu1 %v401_v23, %s708_s10 }
  0x15   : > { %268 = vrot.lane.b32.xlu0 %v267_v21, %s707_s9 }
  0x17   : > { %459 = vrot.lane.b32.xlu1 %v458_v29, %s710_s12 }
  0x19   : > { %363 = vrot.lane.b32.xlu0 %v362_v27, %s709_s11 }
  0x81   : > { %v307_v33 = vpop.permute.xlu1 %306 }
  0x82   : > { %v308_v46 = vrot.slane %v307_v33, 4 }
  0x83   : > { %v204_v30 = vpop.permute.xlu0 %203 }
  0x84   : > { %v205_v31 = vrot.slane %v204_v30, 4  ;;  %v310_v50 = vsel %vm309_vm7, %v308_v46, %v307_v33 }
  0x85   : > { %v403_v35 = vpop.permute.xlu1 %402 }
  0x86   : > { %v207_v32 = vsel %vm206_vm3, %v205_v31, %v204_v30  ;;  %215 = vst.msk [vmem:[#allocation2 + $0x8] sm:$0xf] %vm214_vm4, %v205_v31  ;;  %v404_v37 = vrot.slane %v403_v35, 4  ;;  %vm505_vm3 = vcmask 1043456   ;;  %vm501_vm4 = vcmask 293888  }
  0x87   : > { %213 = vst.msk [vmem:[#allocation2] sm:$0xff] %vm212_vm5, %v207_v32  ;;  %v269_v40 = vpop.permute.xlu0 %268 }
  0x88   : > { %v270_v41 = vrot.slane %v269_v40, 4  ;;  %v406_v62 = vsel %vm405_vm9, %v404_v37, %v403_v35 }
  0x89   : > { %v460_v0 = vpop.permute.xlu1 %459 }
  0x8a   : > { %v272_v48 = vsel %vm271_vm6, %v270_v41, %v269_v40  ;;  %v461_v3 = vrot.slane %v460_v0, 4 }
  0x8b   : > { %v364_v51 = vpop.permute.xlu0 %363 }
  0x8c   : > { %v365_v54 = vrot.slane %v364_v51, 4  ;;  %v463_v6 = vsel %vm462_vm10, %v461_v3, %v460_v0 }
  0x8d   : > { %v333_v36 = vld [vmem:[#allocation2 + $0x8] sm:$0xf] }
  0x8e   : > { %v777_v34 = vld [vmem:[#allocation2] sm:$0xff]  ;;  %341 = vrot.lane.b32.xlu0 %v333_v36, %s712_s14  ;;  %v390_v38 = vld [vmem:[#allocation2 + $0x8] sm:$0xf]  ;;  %v367_v57 = vsel %vm366_vm8, %v365_v54, %v364_v51 }
  0x8f   : > { %435 = vrot.lane.b32.xlu1 %v777_v34, %s711_s13  ;;  %v229_v39 = vmul.f32 %v227_v28, %v777_v34  ;;  %v694_v42 = vld [vmem:[#allocation2 + $0x8] ss:$0 sps:$4 sm:$0xff]   ;;  %v410_v45 = vmul.f32 %v404_v37, %v390_v38  ;;  %v275_v52 = vmul.f32 %v272_v48, %v777_v34  ;;  %v313_v53 = vmul.f32 %v310_v50, %v777_v34 }
  0x90   : > { %v255_v44 = vld [vmem:[#allocation2 + $0x8] sm:$0xf]  ;;  %v336_v56 = vcombine.high %v777_v34, %v777_v34  ;;  %v431_v59 = vcombine.low %v777_v34, %v777_v34  ;;  %v370_v60 = vmul.f32 %v367_v57, %v777_v34  ;;  %v409_v2 = vmul.f32 %v406_v62, %v777_v34 }
  0x91   : > { %v231_v43 = vcombine.high %v229_v39, %v229_v39  ;;  %233 = vst [vmem:[#allocation3] sm:$0xf] %v229_v39  ;;  %v276_v47 = vmul.f32 %v270_v41, %v255_v44  ;;  %v695_v49 = vld [vmem:[#allocation2 + $0x8] ss:$0 sps:$4 sm:$0xff]   ;;  %v279_v4 = vcombine.high %v275_v52, %v275_v52  ;;  %v317_v7 = vcombine.low %v313_v53, %v313_v53 }
  0x92   : > { %243 = vrot.lane.b32.xlu0 %v777_v34, %s713_s17  ;;  %v351_v55 = vld [vmem:[#allocation2 + $0x8] sm:$0xf]  ;;  %v466_v8 = vmul.f32 %v463_v6, %v777_v34  ;;  %v413_v9 = vcombine.high %v409_v2, %v409_v2  ;;  %v374_v10 = vcombine.low %v370_v60, %v370_v60  ;;  %v484_v6 = vld [vmem:[%s827_s1] sm:$0xff] }
  0x93   : > { %337 = vrot.lane.b32.xlu1 %v777_v34, %s712_s14  ;;  %234 = vst [vmem:[#allocation3 + $0x8] sm:$0xf] %v231_v43  ;;  %v371_v58 = vmul.f32 %v365_v54, %v351_v55  ;;  %v294_v61 = vld [vmem:[#allocation2 + $0x8] sm:$0xf] }
  0x94   : > { %v314_v1 = vmul.f32 %v308_v46, %v294_v61  ;;  %v470_v11 = vcombine.high %v466_v8, %v466_v8  ;;  %v447_v12 = vld [vmem:[#allocation2 + $0x8] sm:$0xf] }
  0x95   : > { %v375_v63 = vcombine.low %v371_v58, %v371_v58  ;;  %v467_v13 = vmul.f32 %v461_v3, %v447_v12 }
  0x96   : > { %418 = vrot.lane.b32.xlu0 %v410_v45, %s714_s18  ;;  %v318_v5 = vcombine.low %v314_v1, %v314_v1 }
  0x97   : > { %245 = vrot.lane.b32.xlu1 %v694_v42, %s713_s17 }
  0x9a   : > { %437 = vrot.lane.b32.xlu0 %v695_v49, %s711_s13 }
  0x9b   : > { %284 = vrot.lane.b32.xlu1 %v276_v47, %s715_s19 }
  0x9e   : > { %321 = vrot.lane.b32.xlu0 %v313_v53, %s716_s20 }
  0x9f   : > { %280 = vrot.lane.b32.xlu1 %v275_v52, %s715_s19 }
  0xa2   : > { %241 = vrot.lane.b32.xlu0 %v431_v59, %s713_s17 }
  0xa3   : > { %339 = vrot.lane.b32.xlu1 %v336_v56, %s712_s14 }
  0xa6   : > { %380 = vrot.lane.b32.xlu0 %v375_v63, %s717_s21 }
  0xa7   : > { %378 = vrot.lane.b32.xlu1 %v370_v60, %s717_s21 }
  0xaa   : > { %282 = vrot.lane.b32.xlu0 %v279_v4, %s715_s19 }
  0xab   : > { %414 = vrot.lane.b32.xlu1 %v409_v2, %s714_s18 }
  0xae   : > { %319 = vrot.lane.b32.xlu0 %v317_v7, %s716_s20 }
  0xaf   : > { %323 = vrot.lane.b32.xlu1 %v318_v5, %s716_s20 }
  0xb2   : > { %376 = vrot.lane.b32.xlu0 %v374_v10, %s717_s21 }
  0xb3   : > { %416 = vrot.lane.b32.xlu1 %v413_v9, %s714_s18 }
  0xb6   : > { %433 = vrot.lane.b32.xlu0 %v431_v59, %s711_s13 }
  0xb7   : > { %473 = vrot.lane.b32.xlu1 %v470_v11, %s718_s22 }
  0xba   : > { %475 = vrot.lane.b32.xlu0 %v467_v13, %s718_s22 }
  0xbb   : > { %471 = vrot.lane.b32.xlu1 %v466_v8, %s718_s22 }
  0xbe   : > { %498 = vperm.xlu0 %691, %v495_v15  }
 0x100   : > { %v342_v17 = vpop.permute.xlu0 %341 }
 0x101   : > { %v436_v16 = vpop.permute.xlu1 %435 }
 0x104   : > { %v244_v19 = vpop.permute.xlu0 %243 }
 0x105   : > { %v338_v18 = vpop.permute.xlu1 %337 }
 0x108   : > { %v419_v21 = vpop.permute.xlu0 %418 }
 0x109   : > { %v246_v20 = vpop.permute.xlu1 %245 }
 0x10a   : > { %v249_v22 = vsel %vm247_vm11, %v244_v19, %v246_v20 }
 0x10b   : > { %253 = vst [vmem:[#allocation3 + $0x8] sm:$0xf0] %v249_v22 }
 0x10c   : > { %v438_v24 = vpop.permute.xlu0 %437 }
 0x10d   : > { %v285_v23 = vpop.permute.xlu1 %284  ;;  %v441_v25 = vsel %vm439_vm12, %v436_v16, %v438_v24 }
 0x10e   : > { %445 = vst [vmem:[#allocation3 + $0x38] sm:$0xf0] %v441_v25 }
 0x110   : > { %v322_v27 = vpop.permute.xlu0 %321 }
 0x111   : > { %v281_v26 = vpop.permute.xlu1 %280 }
 0x112   : > { %v486_v51 = vld [vmem:[#allocation3 + $0x8] sm:$0xff] }
 0x114   : > { %v242_v29 = vpop.permute.xlu0 %241 }
 0x115   : > { %v340_v28 = vpop.permute.xlu1 %339  ;;  %v248_v32 = vsel %vm247_vm11, %v242_v29, %v244_v19 }
 0x116   : > { %v344_v30 = vsel %vm343_vm13, %v338_v18, %v340_v28  ;;  %v345_v31 = vsel %vm343_vm13, %v340_v28, %v342_v17  ;;  %252 = vst [vmem:[#allocation3] sm:$0xf0] %v248_v32 }
 0x117   : > { %348 = vst [vmem:[#allocation3 + $0x20] sm:$0xf] %v344_v30  ;;  %349 = vst [vmem:[#allocation3 + $0x28] sm:$0xf] %v345_v31 }
 0x118   : > { %v381_v34 = vpop.permute.xlu0 %380 }
 0x119   : > { %v379_v33 = vpop.permute.xlu1 %378 }
 0x11a   : > { %v384_v35 = vsel %vm382_vm14, %v379_v33, %v381_v34 }
 0x11b   : > { %388 = vst [vmem:[#allocation3 + $0x28] sm:$0xf0] %v384_v35 }
 0x11c   : > { %v283_v37 = vpop.permute.xlu0 %282 }
 0x11d   : > { %v415_v36 = vpop.permute.xlu1 %414  ;;  %v287_v38 = vsel %vm286_vm15, %v281_v26, %v283_v37  ;;  %v288_v39 = vsel %vm286_vm15, %v283_v37, %v285_v23  ;;  %v485_v55 = vld [vmem:[#allocation3] sm:$0xff] }
 0x11e   : > { %291 = vst [vmem:[#allocation3 + $0x10] sm:$0xf] %v287_v38  ;;  %292 = vst [vmem:[#allocation3 + $0x18] sm:$0xf] %v288_v39 }
 0x120   : > { %v320_v41 = vpop.permute.xlu0 %319 }
 0x121   : > { %v324_v40 = vpop.permute.xlu1 %323  ;;  %v326_v43 = vsel %vm325_vm0, %v320_v41, %v322_v27 }
 0x122   : > { %v327_v42 = vsel %vm325_vm0, %v322_v27, %v324_v40  ;;  %330 = vst [vmem:[#allocation3 + $0x10] sm:$0xf0] %v326_v43  ;;  %v490_v61 = vld [vmem:[#allocation3 + $0x28] sm:$0xff] }
 0x123   : > { %331 = vst [vmem:[#allocation3 + $0x18] sm:$0xf0] %v327_v42 }
 0x124   : > { %v377_v45 = vpop.permute.xlu0 %376 }
 0x125   : > { %v417_v44 = vpop.permute.xlu1 %416  ;;  %v383_v48 = vsel %vm382_vm14, %v377_v45, %v379_v33 }
 0x126   : > { %v421_v46 = vsel %vm420_vm1, %v415_v36, %v417_v44  ;;  %v422_v47 = vsel %vm420_vm1, %v417_v44, %v419_v21  ;;  %387 = vst [vmem:[#allocation3 + $0x20] sm:$0xf0] %v383_v48 }
 0x127   : > { %425 = vst [vmem:[#allocation3 + $0x30] sm:$0xf] %v421_v46  ;;  %426 = vst [vmem:[#allocation3 + $0x38] sm:$0xf] %v422_v47 }
 0x128   : > { %v434_v50 = vpop.permute.xlu0 %433 }
 0x129   : > { %v474_v49 = vpop.permute.xlu1 %473  ;;  %v440_v53 = vsel %vm439_vm12, %v434_v50, %v436_v16  ;;  %v487_v56 = vld [vmem:[#allocation3 + $0x10] sm:$0xff] }
 0x12a   : > { %v488_v52 = vld [vmem:[#allocation3 + $0x18] sm:$0xff]  ;;  %444 = vst [vmem:[#allocation3 + $0x30] sm:$0xf0] %v440_v53  ;;  %v661_v57 = vpack.c.bf16 %v487_v56, %v485_v55 }
 0x12b   : > { %v659_v54 = vpack.c.bf16 %v488_v52, %v486_v51 }
 0x12c   : > { %v476_v59 = vpop.permute.xlu0 %475 }
 0x12d   : > { %v472_v58 = vpop.permute.xlu1 %471  ;;  %660 = vmatprep.subr.bf16.mxu0 %v659_v54  ;;  %v479_v63 = vsel %vm477_vm2, %v474_v49, %v476_v59  ;;  %v489_v1 = vld [vmem:[#allocation3 + $0x20] sm:$0xff] }
 0x12e   : > { %v478_v60 = vsel %vm477_vm2, %v472_v58, %v474_v49  ;;  %662 = vmatpush1.bf16.msra.mxu0 %v661_v57  ;;  %v492_v62 = vld [vmem:[#allocation3 + $0x38] sm:$0xff]  ;;  %483 = vst [vmem:[#allocation3 + $0x48] sm:$0xf] %v479_v63 }
 0x12f   : > { %482 = vst [vmem:[#allocation3 + $0x40] sm:$0xf] %v478_v60  ;;  %v663_v0 = vpack.c.bf16 %v492_v62, %v490_v61 }
 0x131   : > { %664 = vmatprep.subr.bf16.mxu0 %v663_v0  ;;  %v491_v2 = vld [vmem:[#allocation3 + $0x30] sm:$0xff] }
 0x132   : > { %v665_v3 = vpack.c.bf16 %v491_v2, %v489_v1 }
 0x134   : > { %666 = vmatpush1.bf16.msra.mxu0 %v665_v3 }
 0x135   : > { %v494_v4 = vld [vmem:[#allocation3 + $0x48] sm:$0xf] }
 0x136   : > { %v493_v5 = vld [vmem:[#allocation3 + $0x40] sm:$0xf]  ;;  %652 = vmatprep.subr.msk.mxu0 %vm505_vm3, %v494_v4 }
 0x138   : > { %653 = vmatpush1.msk.msra.mxu0 %vm505_vm3, %v493_v5 }
 0x139   : > { %654 = vmatmul.mubr.msk.f32.vlgmr.msra.gmra.mrb[0].mxu0 %vm501_vm4, %v484_v6 }
 0x13d   : > { %v499_v7 = vpop.permute.xlu0 %498 }
 0x20c   : > { %v578_v8 = vpop.f32.mrb[0].mxu0 }
 0x20d   : > { %v579_v9 = vadd.f32 %v578_v8, %v499_v7  ;;  %v580_v10 = vpop.f32.mrb[1].mxu0 }
 0x20e   : > { %v581_v11 = vadd.f32 %v580_v10, %v499_v7 }
 0x20f   : > { %583 = vst [vmem:[%s197_s30] sm:$0xff] %v579_v9 }
 0x210   : > { %584 = vst [vmem:[%s197_s30 + $0x8] sm:$0xff] %v581_v11 }
 0x211 PF: > { %s14_s15 = sadd.s32 1, %s702_s15  }
 0x212   : > { %p11_p4 = scmp.ge.s32.totalorder %s14_s15, 4  }
 0x214   :  { %13 = sbr.rel (!%p11_p4) target bundleno = 1 (0x1), region = 67 }

</bundles_post_ra>
